<compile_context>
chip_gen: v7x
topology: tpu7x:2x2x1
jax: 0.10.0
libtpu: 0.0.40
codegen_flags: <defaults>
</compile_context>

<pallas_src>
import functools

import jax
import jax.numpy as jnp
from jax.experimental import pallas as pl
from jax.experimental.pallas import tpu as pltpu


# ---------------------------------------------------------------------------
# Generation-aware VMEM budgets
# ---------------------------------------------------------------------------
def _physical_vmem_bytes():
    default = 64 * 1024 * 1024            # v7x floor: safe on every generation
    try:
        info = pltpu.get_tpu_info()
        for name in ("vmem_capacity_bytes", "vmem_size_bytes", "vmem_bytes"):
            cap = int(getattr(info, name, 0) or 0)
            if cap > 0:
                return cap
    except Exception:
        pass
    return default


_VMEM_PHYS = _physical_vmem_bytes()
# Scoped limit: 3/4 of physical -> ~96 MiB on 128-MiB v5e/v6e, ~48 MiB on v7x.
_VMEM_LIMIT_BYTES = (3 * _VMEM_PHYS) // 4
# In-kernel working-set budget (double-buffered blocks + f32 intermediates).
_WORKSET_BUDGET = _VMEM_LIMIT_BYTES // 2
# Keep >= 4 parallel blocks whenever the row count allows it, so both v7x
# TensorCores (x2 pipeline depth) get work; harmless on single-TC v5e/v6e.
_MIN_BLOCKS = 4


def _round_down(x, m):
    return (x // m) * m


def _sublane_min(itemsize):
    """Minimum packed sublane tile for a dtype: 8 f32 / 16 bf16 / 32 int8."""
    return max(8, 32 // max(int(itemsize), 1))


def _pick_row_tile(n_rows, work_bytes_per_row, budget_bytes, *, sub=8,
                   min_blocks=1, override=None):
    """Rows per block.

    `work_bytes_per_row` accounts for the whole in-kernel working set
    (double-buffered input/output blocks + f32 upcasts + iota/where temps).
    The result is either the full row extent (always a legal block shape) or
    a multiple of `sub`; when there are enough rows it is also capped so the
    grid has at least `min_blocks` blocks.
    """
    n_rows = int(n_rows)
    if override is not None:
        return max(int(override), 1)
    cap = max(sub, int(budget_bytes) // max(int(work_bytes_per_row), 1))
    if min_blocks > 1 and n_rows >= min_blocks * sub:
        cap = min(cap, -(-n_rows // min_blocks))
    if cap >= n_rows:
        return n_rows
    return max(sub, _round_down(cap, sub))


# ---------------------------------------------------------------------------
# Cross-entropy kernels: grid over flattened B*T rows, vocab on lanes
# ---------------------------------------------------------------------------
def _ce_work_bytes_per_row(vocab, in_itemsize):
    # 2x input (double-buffered logits block) + ~4 live f32/i32 (rt, V)
    # intermediates (upcast, exp, lane iota, select temp) + small per-row out.
    return (2 * in_itemsize + 16) * vocab + 64


def _ce_rows_flat(logits_ref, tgt_ref, padding_idx, n_valid_rows):
    """Per-row CE loss and validity mask for one flattened row-tile."""
    rt = logits_ref.shape[0]
    i = pl.program_id(0)

    x = logits_ref[...].astype(jnp.float32)                  # (rt, V)
    tgt = tgt_ref[...]                                       # (rt, 1) int32

    # Rows past B*T in the ragged last tile were never backed by real HBM
    # data; zero them so the LSE stays finite.
    row = jax.lax.broadcasted_iota(jnp.int32, (rt, 1), 0) + i * rt
    in_range = row < n_valid_rows
    x = jnp.where(in_range, x, 0.0)

    m = jnp.max(x, axis=-1, keepdims=True)
    lse = jnp.log(jnp.sum(jnp.exp(x - m), axis=-1, keepdims=True)) + m

    col = jax.lax.broadcasted_iota(jnp.int32, x.shape, 1)    # (rt, V)
    tgt_logit = jnp.sum(jnp.where(col == tgt, x, 0.0), axis=-1, keepdims=True)

    # Targets were pre-padded with padding_idx for the attn-shift tail, so the
    # padding check also masks the dropped time step.
    valid = jnp.logical_and(in_range, tgt != padding_idx).astype(jnp.float32)
    per = (lse - tgt_logit) * valid                          # ignored rows -> 0
    return per, valid


def _ce_partial_kernel(logits_ref, tgt_ref, out_ref, *, padding_idx, n_valid_rows):
    """'mean' path: one packed (8,128) partial per block.

    Sublane 0 carries the block loss sum, sublane 1 the valid-token count:
    a single tiny aligned output DMA per block instead of two.
    """
    per, valid = _ce_rows_flat(logits_ref, tgt_ref, padding_idx, n_valid_rows)
    s = jnp.sum(per)
    c = jnp.sum(valid)
    sub = jax.lax.broadcasted_iota(jnp.int32, out_ref.shape, 0)   # (8, 128)
    out_ref[...] = jnp.where(sub == 0, s, jnp.where(sub == 1, c, 0.0))


def _ce_pertoken_kernel(logits_ref, tgt_ref, loss_ref, *, padding_idx, n_valid_rows):
    """'none' / batch_weights path: per-token losses.

    TODO(synk): output stays lane-width-1 (masked vst) instead of a lane-dense
    transpose: the per-token writeback is 1/V of the logits read traffic and a
    128x-broadcast slab would cost more HBM bytes than the masked stores.
    """
    per, _ = _ce_rows_flat(logits_ref, tgt_ref, padding_idx, n_valid_rows)
    loss_ref[...] = per


def _ce_flat_pallas(logits, tgt, padding_idx, t_valid, want_per_token, row_tile=None):
    """logits: (B, T, V); tgt: (B, t_valid) aligned with logits[:, :t_valid].

    No slicing/copy of the big logits tensor: (B, T, V) is reshaped (free) to
    (B*T, V); the attn time shift and ragged tails are handled by padding the
    tiny int32 target tensor with padding_idx and masking in-kernel."""
    B, T, V = logits.shape
    assert tgt.shape == (B, t_valid), (tgt.shape, (B, t_valid))
    N = B * T

    flat = logits.reshape(N, V)                    # contiguous reshape: no copy
    tgt = tgt.astype(jnp.int32)
    if t_valid != T:                               # attn shift: pad dropped tail
        tgt = jnp.concatenate(
            [tgt, jnp.full((B, T - t_valid), padding_idx, jnp.int32)], axis=1)
    tgt = tgt.reshape(N, 1)

    sub = _sublane_min(logits.dtype.itemsize)
    work = _ce_work_bytes_per_row(V, logits.dtype.itemsize)
    tt = _pick_row_tile(N, work, _WORKSET_BUDGET, sub=sub,
                        min_blocks=_MIN_BLOCKS, override=row_tile)
    nb = -(-N // tt)

    in_specs = [
        pl.BlockSpec((tt, V), lambda i: (i, 0)),   # logits tile
        pl.BlockSpec((tt, 1), lambda i: (i, 0)),   # target tile
    ]
    cparams = pltpu.CompilerParams(
        dimension_semantics=("parallel",),
        vmem_limit_bytes=_VMEM_LIMIT_BYTES)

    if want_per_token:
        kernel = functools.partial(_ce_pertoken_kernel,
                                   padding_idx=padding_idx, n_valid_rows=N)
        loss = pl.pallas_call(
            kernel,
            out_shape=jax.ShapeDtypeStruct((N, 1), jnp.float32),
            grid_spec=pltpu.PrefetchScalarGridSpec(
                num_scalar_prefetch=0, grid=(nb,),
                in_specs=in_specs,
                out_specs=pl.BlockSpec((tt, 1), lambda i: (i, 0))),
            compiler_params=cparams,
        )(flat, tgt)
        return loss.reshape(B, T)[:, :t_valid]                 # (B, t_valid)

    kernel = functools.partial(_ce_partial_kernel,
                               padding_idx=padding_idx, n_valid_rows=N)
    partials = pl.pallas_call(
        kernel,
        out_shape=jax.ShapeDtypeStruct((nb, 8, 128), jnp.float32),
        grid_spec=pltpu.PrefetchScalarGridSpec(
            num_scalar_prefetch=0, grid=(nb,),
            in_specs=in_specs,
            out_specs=pl.BlockSpec((None, 8, 128), lambda i: (i, 0, 0))),
        compiler_params=cparams,
    )(flat, tgt)
    return partials[:, 0, 0], partials[:, 1, 0]                # (nb,) partials


def cross_entropy_mean_pallas(logits, tgt, padding_idx, t_valid=None, row_tile=None):
    """Mean masked CE over logits[:, :t_valid] vs tgt (B, t_valid)."""
    B, T, V = logits.shape
    if t_valid is None:
        t_valid = T
    sums, cnts = _ce_flat_pallas(logits, tgt, padding_idx, t_valid,
                                 want_per_token=False, row_tile=row_tile)
    return jnp.sum(sums) / jnp.maximum(jnp.sum(cnts), 1.0)


def cross_entropy_per_token_pallas(logits, tgt, padding_idx, t_valid=None,
                                   row_tile=None):
    """Per-token masked CE (B, t_valid); ignored positions are 0."""
    B, T, V = logits.shape
    if t_valid is None:
        t_valid = T
    return _ce_flat_pallas(logits, tgt, padding_idx, t_valid,
                           want_per_token=True, row_tile=row_tile)


# ---------------------------------------------------------------------------
# Row-wise softmax / log-softmax / argmax over the vocab axis
# ---------------------------------------------------------------------------
def _softmax_kernel(x_ref, o_ref):
    x = x_ref[...].astype(jnp.float32)
    m = jnp.max(x, axis=-1, keepdims=True)
    e = jnp.exp(x - m)
    s = jnp.sum(e, axis=-1, keepdims=True)
    o_ref[...] = (e / s).astype(o_ref.dtype)       # exact norm: HBM-bound anyway


def _log_softmax_kernel(x_ref, o_ref):
    x = x_ref[...].astype(jnp.float32)
    m = jnp.max(x, axis=-1, keepdims=True)
    s = x - m
    lse = jnp.log(jnp.sum(jnp.exp(s), axis=-1, keepdims=True))
    o_ref[...] = (s - lse).astype(o_ref.dtype)


def _argmax_kernel(x_ref, idx_ref):
    x = x_ref[...].astype(jnp.float32)
    vocab = x.shape[-1]
    m = jnp.max(x, axis=-1, keepdims=True)
    col = jax.lax.broadcasted_iota(jnp.int32, x.shape, 1)
    idx = jnp.min(jnp.where(x == m, col, vocab), axis=-1, keepdims=True)
    idx_ref[...] = idx.astype(jnp.int32)


def _rowwise_vocab_call(kernel, logits, out_dtype=None, row_tile=None):
    shape = logits.shape
    V = shape[-1]
    flat = logits.reshape(-1, V)                    # contiguous reshape: no copy
    N = flat.shape[0]
    in_isz = flat.dtype.itemsize
    out_dtype = flat.dtype if out_dtype is None else jnp.dtype(out_dtype)
    out_isz = out_dtype.itemsize
    sub = _sublane_min(min(in_isz, out_isz))
    work = (2 * in_isz + 2 * out_isz + 12) * V + 64        # dbuf in+out + f32 temps
    tn = _pick_row_tile(N, work, _WORKSET_BUDGET, sub=sub,
                        min_blocks=_MIN_BLOCKS, override=row_tile)
    nb = -(-N // tn)
    out = pl.pallas_call(
        kernel,
        out_shape=jax.ShapeDtypeStruct((N, V), out_dtype),
        grid_spec=pltpu.PrefetchScalarGridSpec(
            num_scalar_prefetch=0, grid=(nb,),
            in_specs=[pl.BlockSpec((tn, V), lambda i: (i, 0))],
            out_specs=pl.BlockSpec((tn, V), lambda i: (i, 0))),
        compiler_params=pltpu.CompilerParams(
            dimension_semantics=("parallel",),
            vmem_limit_bytes=_VMEM_LIMIT_BYTES),
    )(flat)
    return out.reshape(shape)


def softmax_pallas(logits, out_dtype=None, row_tile=None):
    """Row softmax over vocab; `out_dtype=jnp.bfloat16` halves the writeback."""
    return _rowwise_vocab_call(_softmax_kernel, logits, out_dtype, row_tile)


def log_softmax_pallas(logits, out_dtype=None, row_tile=None):
    return _rowwise_vocab_call(_log_softmax_kernel, logits, out_dtype, row_tile)


def argmax_vocab_pallas(logits, row_tile=None):
    """Greedy argmax over the vocab axis -> int32 ids, no softmax writeback."""
    shape = logits.shape
    V = shape[-1]
    flat = logits.reshape(-1, V)
    N = flat.shape[0]
    in_isz = flat.dtype.itemsize
    sub = _sublane_min(in_isz)
    work = (2 * in_isz + 12) * V + 64
    tn = _pick_row_tile(N, work, _WORKSET_BUDGET, sub=sub,
                        min_blocks=_MIN_BLOCKS, override=row_tile)
    nb = -(-N // tn)
    idx = pl.pallas_call(
        _argmax_kernel,
        out_shape=jax.ShapeDtypeStruct((N, 1), jnp.int32),
        grid_spec=pltpu.PrefetchScalarGridSpec(
            num_scalar_prefetch=0, grid=(nb,),
            in_specs=[pl.BlockSpec((tn, V), lambda i: (i, 0))],
            out_specs=pl.BlockSpec((tn, 1), lambda i: (i, 0))),
        compiler_params=pltpu.CompilerParams(
            dimension_semantics=("parallel",),
            vmem_limit_bytes=_VMEM_LIMIT_BYTES),
    )(flat)
    return idx.reshape(shape[:-1])


# ---------------------------------------------------------------------------
# Module-equivalent wrapper
# ---------------------------------------------------------------------------
class ForwardTextRecognitionLogitsPallas:
    def __init__(self, loss_type, padding_idx, reduction="mean"):
        assert loss_type in ("ce", "attn", "ctc"), f"Unexpected loss_type: {loss_type}"
        assert reduction in ("none", "mean")
        self.loss_type = loss_type
        self.padding_idx = padding_idx
        self.reduction = reduction
        self.training = True

    # ---- 'ce' path ----
    def forward_ce(self, logits, tgt=None, batch_weights=None):
        if tgt is None:
            # TODO(synk): attn_postprocessor decodes indices to words (string
            # op, no Pallas equivalent); return greedy argmax token ids.
            return argmax_vocab_pallas(logits)
        if self.training:
            if batch_weights is not None:
                raise NotImplementedError     # matches torch `raise NotImplemented`
            if self.reduction == "mean":
                loss = cross_entropy_mean_pallas(logits, tgt, self.padding_idx)
            else:
                loss = cross_entropy_per_token_pallas(logits, tgt, self.padding_idx)
            return dict(ce_loss=loss)
        # TODO(synk): indices2word is a string op; return ids + targets.
        return (argmax_vocab_pallas(logits), tgt)

    # ---- 'attn' path (time shift handled by target padding; logits not copied) ----
    def forward_attention(self, logits, tgt=None, batch_weights=None):
        B, T, V = logits.shape
        if tgt is None:
            return argmax_vocab_pallas(logits)[:, :-1]
        if self.training:
            tg = tgt[:, 1:]                    # tiny int tensor: cheap slice
            if batch_weights is not None:
                per = cross_entropy_per_token_pallas(
                    logits, tg, self.padding_idx, t_valid=T - 1)    # (B, T-1)
                eff = jnp.sum(tg != self.padding_idx, axis=-1)
                loss = per.sum(-1) / eff
                return dict(attn_loss=jnp.sum(loss * batch_weights))
            if self.reduction == "mean":
                loss = cross_entropy_mean_pallas(
                    logits, tg, self.padding_idx, t_valid=T - 1)
            else:
                loss = cross_entropy_per_token_pallas(
                    logits, tg, self.padding_idx, t_valid=T - 1)
            return dict(attn_loss=loss)
        return (argmax_vocab_pallas(logits)[:, :-1], tgt[:, 1:])

    # ---- 'ctc' path ----
    def forward_ctc(self, logits, tgt=None, batch_weights=None):
        if tgt is None:
            # TODO(synk): ctc_postprocessor (greedy collapse + word decode) is
            # a string op; return the greedy argmax ids it derives from the
            # softmax (V-times less HBM writeback than the full softmax).
            return argmax_vocab_pallas(logits)
        if self.training:
            if batch_weights is not None:
                raise NotImplementedError
            # TODO(synk): CTC forward-backward DP loss has no clean Pallas
            # mapping; return the fused log-softmax the DP consumes instead.
            return dict(ctc_log_probs=log_softmax_pallas(logits))
        return (argmax_vocab_pallas(logits), tgt)

    def __call__(self, logits, tgt=None, batch_weights=None, loss_type=None):
        lt = self.loss_type if loss_type is None else loss_type
        if lt == "ctc":
            return self.forward_ctc(logits, tgt, batch_weights)
        if lt == "ce":
            return self.forward_ce(logits, tgt, batch_weights)
        if lt == "attn":
            return self.forward_attention(logits, tgt, batch_weights)
        raise ValueError(f"Unexpected loss_type: {lt}")


# ---------------------------------------------------------------------------
if __name__ == "__main__":
    key = jax.random.PRNGKey(0)
    B, T, V = 2, 8, 32
    PAD = 0

    k1, k2, k3, k4, k5, k6 = jax.random.split(key, 6)
    logits = jax.random.normal(k1, (B, T, V), dtype=jnp.float32)
    tgt = jax.random.randint(k2, (B, T), 1, V).astype(jnp.int32)
    tgt = tgt.at[:, 0].set(2)        # bos-like token
    tgt = tgt.at[0, 6:].set(PAD)     # some padding

    # training losses
    mod_attn = ForwardTextRecognitionLogitsPallas("attn", PAD)
    out_attn = mod_attn(logits, tgt)
    bw = jnp.array([0.25, 0.75], dtype=jnp.float32)
    out_attn_w = mod_attn(logits, tgt, batch_weights=bw)

    mod_ce = ForwardTextRecognitionLogitsPallas("ce", PAD)
    out_ce = mod_ce(logits, tgt)

    mod_ctc = ForwardTextRecognitionLogitsPallas("ctc", PAD)
    out_ctc = mod_ctc(logits, tgt)          # fused log-softmax (CTC-loss input)

    # inference: ctc greedy argmax ids + softmax variants
    mod_ctc.training = False
    ids = mod_ctc(logits)
    probs = softmax_pallas(logits)
    logits_bf16 = logits.astype(jnp.bfloat16)
    probs_bf16 = softmax_pallas(logits_bf16)
    probs_f32_to_bf16 = softmax_pallas(logits, out_dtype=jnp.bfloat16)

    # multi-tile + ragged-tail exercise (small row_tile overrides)
    T2 = 20
    logits2 = jax.random.normal(k3, (B, T2, V), dtype=jnp.float32)
    tgt2 = jax.random.randint(k4, (B, T2), 1, V).astype(jnp.int32)
    tgt2 = tgt2.at[1, 15:].set(PAD)
    attn2 = cross_entropy_mean_pallas(logits2, tgt2[:, 1:], PAD,
                                      t_valid=T2 - 1, row_tile=16)
    per2 = cross_entropy_per_token_pallas(logits2, tgt2[:, 1:], PAD,
                                          t_valid=T2 - 1, row_tile=16)
    probs2 = softmax_pallas(logits2, row_tile=32)

    # larger shape: exercises the auto tile picker + >= _MIN_BLOCKS grid + bf16
    B3, T3, V3 = 4, 64, 512
    logits3 = jax.random.normal(k5, (B3, T3, V3), dtype=jnp.float32)
    tgt3 = jax.random.randint(k6, (B3, T3), 1, V3).astype(jnp.int32)
    tgt3 = tgt3.at[2, 50:].set(PAD)
    ce3 = cross_entropy_mean_pallas(logits3, tgt3, PAD)
    logits3_bf16 = logits3.astype(jnp.bfloat16)
    ce3_bf16 = cross_entropy_mean_pallas(logits3_bf16, tgt3, PAD)

    jax.block_until_ready((out_attn, out_attn_w, out_ce, out_ctc, ids, probs,
                           probs_bf16, probs_f32_to_bf16, attn2, per2, probs2,
                           ce3, ce3_bf16))

    # -------- pure-JAX references --------
    def ref_per_token(lg, t):
        lg = lg.astype(jnp.float32)
        lse = jax.scipy.special.logsumexp(lg, axis=-1)
        tl = jnp.take_along_axis(lg, t[..., None], axis=-1)[..., 0]
        return (lse - tl) * (t != PAD)

    def ref_mean(lg, t):
        per = ref_per_token(lg, t)
        valid = (t != PAD).astype(jnp.float32)
        return per.sum() / jnp.maximum(valid.sum(), 1.0)

    ref_attn = ref_mean(logits[:, :-1], tgt[:, 1:])
    ref_ce = ref_mean(logits, tgt)
    per_ref = ref_per_token(logits[:, :-1], tgt[:, 1:])
    eff = jnp.sum(tgt[:, 1:] != PAD, axis=-1)
    ref_attn_w = jnp.sum((per_ref.sum(-1) / eff) * bw)

    assert jnp.allclose(out_attn["attn_loss"], ref_attn, atol=1e-4), (
        out_attn["attn_loss"], ref_attn)
    assert jnp.allclose(out_ce["ce_loss"], ref_ce, atol=1e-4), (
        out_ce["ce_loss"], ref_ce)
    assert jnp.allclose(out_attn_w["attn_loss"], ref_attn_w, atol=1e-4), (
        out_attn_w["attn_loss"], ref_attn_w)
    assert jnp.allclose(out_ctc["ctc_log_probs"],
                        jax.nn.log_softmax(logits, axis=-1), atol=1e-4)

    assert ids.dtype == jnp.int32 and ids.shape == (B, T)
    assert jnp.array_equal(ids, jnp.argmax(logits, axis=-1).astype(jnp.int32))

    assert probs.dtype == logits.dtype
    assert jnp.allclose(probs, jax.nn.softmax(logits, axis=-1), atol=1e-5)
    assert probs_bf16.dtype == jnp.bfloat16
    assert jnp.allclose(
        probs_bf16.astype(jnp.float32),
        jax.nn.softmax(logits_bf16.astype(jnp.float32), axis=-1), atol=2e-2)
    assert probs_f32_to_bf16.dtype == jnp.bfloat16
    assert jnp.allclose(probs_f32_to_bf16.astype(jnp.float32),
                        jax.nn.softmax(logits, axis=-1), atol=1e-2)

    assert jnp.allclose(attn2, ref_mean(logits2[:, :-1], tgt2[:, 1:]), atol=1e-4)
    assert jnp.allclose(per2, ref_per_token(logits2[:, :-1], tgt2[:, 1:]), atol=1e-4)
    assert jnp.allclose(probs2, jax.nn.softmax(logits2, axis=-1), atol=1e-5)

    assert jnp.allclose(ce3, ref_mean(logits3, tgt3), atol=1e-3)
    assert jnp.allclose(
        ce3_bf16,
        ref_mean(logits3_bf16.astype(jnp.float32), tgt3), atol=1e-3)

    print("KERNEL_OK")
</pallas_src>

<mosaic_0001>
module attributes {stable_mosaic.version = 11 : i64} {
  func.func @_ce_partial_kernel(%arg0: i32, %arg1: memref<16x32xf32, #tpu.memory_space<vmem>>, %arg2: memref<16x1xi32, #tpu.memory_space<vmem>>, %arg3: memref<1x8x128xf32, #tpu.memory_space<vmem>>) attributes {dimension_semantics = [#tpu.dimension_semantics<parallel>], iteration_bounds = array<i64: 1>, scalar_prefetch = 0 : i64, scratch_operands = 0 : i64, tpu.core_type = #tpu.core_type<tc>, window_params = [{transform_indices = @transform_0, window_bounds = array<i64: 16, 32>}, {transform_indices = @transform_1, window_bounds = array<i64: 16, 1>}, {transform_indices = @transform_2, window_bounds = array<i64: 1, 8, 128>}]} {
    %c0 = arith.constant 0 : index
    %c0_0 = arith.constant 0 : index
    %0 = vector.load %arg1[%c0, %c0_0] : memref<16x32xf32, #tpu.memory_space<vmem>>, vector<16x32xf32>
    %c0_1 = arith.constant 0 : index
    %c0_2 = arith.constant 0 : index
    %1 = vector.load %arg2[%c0_1, %c0_2] : memref<16x1xi32, #tpu.memory_space<vmem>>, vector<16x1xi32>
    %2 = tpu.iota {dimensions = array<i32: 0>} : vector<16x1xi32>
    %c16_i32 = arith.constant 16 : i32
    %3 = arith.muli %arg0, %c16_i32 : i32
    %4 = vector.broadcast %3 : i32 to vector<16x1xi32>
    %5 = arith.addi %2, %4 : vector<16x1xi32>
    %c16_i32_3 = arith.constant 16 : i32
    %6 = vector.broadcast %c16_i32_3 : i32 to vector<16x1xi32>
    %7 = arith.cmpi slt, %5, %6 : vector<16x1xi32>
    %cst = arith.constant 0.000000e+00 : f32
    %8 = vector.shape_cast %7 : vector<16x1xi1> to vector<16x1xi1>
    %9 = vector.broadcast %8 : vector<16x1xi1> to vector<16x32xi1>
    %10 = vector.broadcast %cst : f32 to vector<16x32xf32>
    %11 = arith.select %9, %0, %10 : vector<16x32xi1>, vector<16x32xf32>
    %cst_4 = arith.constant dense<0xFF800000> : vector<16xf32>
    %12 = vector.multi_reduction <maximumf>, %11, %cst_4 [1] : vector<16x32xf32> to vector<16xf32>
    %13 = vector.shape_cast %12 : vector<16xf32> to vector<16x1xf32>
    %14 = vector.broadcast %13 : vector<16x1xf32> to vector<16x32xf32>
    %15 = arith.subf %11, %14 : vector<16x32xf32>
    %16 = math.exp %15 : vector<16x32xf32>
    %cst_5 = arith.constant dense<0.000000e+00> : vector<16xf32>
    %17 = vector.multi_reduction <add>, %16, %cst_5 [1] : vector<16x32xf32> to vector<16xf32>
    %18 = vector.shape_cast %17 : vector<16xf32> to vector<16x1xf32>
    %19 = math.log %18 : vector<16x1xf32>
    %20 = arith.addf %19, %13 : vector<16x1xf32>
    %21 = tpu.iota {dimensions = array<i32: 1>} : vector<16x32xi32>
    %22 = vector.broadcast %1 : vector<16x1xi32> to vector<16x32xi32>
    %23 = arith.cmpi eq, %21, %22 : vector<16x32xi32>
    %cst_6 = arith.constant 0.000000e+00 : f32
    %24 = vector.broadcast %cst_6 : f32 to vector<16x32xf32>
    %25 = arith.select %23, %11, %24 : vector<16x32xi1>, vector<16x32xf32>
    %cst_7 = arith.constant dense<0.000000e+00> : vector<16xf32>
    %26 = vector.multi_reduction <add>, %25, %cst_7 [1] : vector<16x32xf32> to vector<16xf32>
    %27 = vector.shape_cast %26 : vector<16xf32> to vector<16x1xf32>
    %c0_i32 = arith.constant 0 : i32
    %28 = vector.broadcast %c0_i32 : i32 to vector<16x1xi32>
    %29 = arith.cmpi ne, %1, %28 : vector<16x1xi32>
    %30 = arith.andi %7, %29 : vector<16x1xi1>
    %31 = arith.extui %30 : vector<16x1xi1> to vector<16x1xi32>
    %32 = arith.sitofp %31 : vector<16x1xi32> to vector<16x1xf32>
    %33 = arith.subf %20, %27 : vector<16x1xf32>
    %34 = arith.mulf %33, %32 : vector<16x1xf32>
    %35 = vector.shape_cast %34 : vector<16x1xf32> to vector<1x16x1xf32>
    %cst_8 = arith.constant dense<0.000000e+00> : vector<1xf32>
    %36 = vector.multi_reduction <add>, %35, %cst_8 [1, 2] : vector<1x16x1xf32> to vector<1xf32>
    %37 = vector.shape_cast %36 : vector<1xf32> to vector<1x1x1xf32>
    %38 = vector.extract %37[0, 0, 0] : f32 from vector<1x1x1xf32>
    %39 = vector.shape_cast %32 : vector<16x1xf32> to vector<1x16x1xf32>
    %cst_9 = arith.constant dense<0.000000e+00> : vector<1xf32>
    %40 = vector.multi_reduction <add>, %39, %cst_9 [1, 2] : vector<1x16x1xf32> to vector<1xf32>
    %41 = vector.shape_cast %40 : vector<1xf32> to vector<1x1x1xf32>
    %42 = vector.extract %41[0, 0, 0] : f32 from vector<1x1x1xf32>
    %43 = tpu.iota {dimensions = array<i32: 0>} : vector<8x128xi32>
    %c0_i32_10 = arith.constant 0 : i32
    %44 = vector.broadcast %c0_i32_10 : i32 to vector<8x128xi32>
    %45 = arith.cmpi eq, %43, %44 : vector<8x128xi32>
    %c1_i32 = arith.constant 1 : i32
    %46 = vector.broadcast %c1_i32 : i32 to vector<8x128xi32>
    %47 = arith.cmpi eq, %43, %46 : vector<8x128xi32>
    %cst_11 = arith.constant 0.000000e+00 : f32
    %48 = vector.broadcast %42 : f32 to vector<8x128xf32>
    %49 = vector.broadcast %cst_11 : f32 to vector<8x128xf32>
    %50 = arith.select %47, %48, %49 : vector<8x128xi1>, vector<8x128xf32>
    %51 = vector.broadcast %38 : f32 to vector<8x128xf32>
    %52 = arith.select %45, %51, %50 : vector<8x128xi1>, vector<8x128xf32>
    %c0_12 = arith.constant 0 : index
    %c0_13 = arith.constant 0 : index
    %c0_14 = arith.constant 0 : index
    %53 = vector.load %arg3[%c0_12, %c0_13, %c0_14] : memref<1x8x128xf32, #tpu.memory_space<vmem>>, vector<1x8x128xf32>
    %54 = vector.shape_cast %53 : vector<1x8x128xf32> to vector<8x128xf32>
    %55 = vector.shape_cast %52 : vector<8x128xf32> to vector<1x8x128xf32>
    tpu.vector_store %arg3[%c0_12, %c0_13, %c0_14], %55 {strides = array<i32>} : memref<1x8x128xf32, #tpu.memory_space<vmem>>, vector<1x8x128xf32>,
    return
  }
  func.func @transform_0(%arg0: i32) -> (i32, i32) {
    %c0_i32 = arith.constant 0 : i32
    %c0_i32_0 = arith.constant 0 : i32
    return %arg0, %c0_i32 : i32, i32
  }
  func.func @transform_1(%arg0: i32) -> (i32, i32) {
    %c0_i32 = arith.constant 0 : i32
    %c0_i32_0 = arith.constant 0 : i32
    return %arg0, %c0_i32 : i32, i32
  }
  func.func @transform_2(%arg0: i32) -> (i32, i32, i32) {
    %c0_i32 = arith.constant 0 : i32
    %c0_i32_0 = arith.constant 0 : i32
    %c0_i32_1 = arith.constant 0 : i32
    return %arg0, %c0_i32, %c0_i32_0 : i32, i32, i32
  }
}

</mosaic_0001>

<bundles_post_ra>
// kernel: tpu_custom_call.1
= control target key start
LH: loop header
LB: loop body
LE: loop exit
PB: predicated region body
PF: predicated region fallthrough
CT: control target
= control target key end

     0   :  { %vm31_vm0 = vcmask 261120   ;;  %v175_v4 = vmov 0   ;;  %s229_s0 = inlined_call_operand.vmem [shape: f32[16,32], index: 0, kind: input, shape index: {}]   ;;  %s230_s1 = inlined_call_operand.vmem [shape: s32[16,1], index: 1, kind: input, shape index: {}]   ;;  %s231_s2 = inlined_call_operand.hbm [shape: f32[1,8,128], index: 2, kind: output, shape index: {}]  }
   0x1   :  { %v12_v0 = vld [vmem:[%s229_s0] sm:$0xff]  ;;  %v13_v1 = vld [vmem:[%s229_s0 + $0x8] sm:$0xff]  ;;  %141 = vset.pattern.permute.xlu1 %v175_v4  ;;  %142 = vset.pattern.permute.xlu0 %v175_v4 }
   0x2   :  { %v14_v2 = vld [vmem:[%s230_s1] sm:$0xff]  ;;  %v32_v3 = vsel %vm31_vm0, %v12_v0, -inf }
   0x3   :  { %7 = vsyncpa [#allocation3], 0  ;;  %33 = vmax.xlane.f32.xlu0 %v32_v3  ;;  %59 = vperm.xlu1 %141, %v14_v2   ;;  %v35_v5 = vsel %vm31_vm0, %v13_v1, -inf  ;;  %v15_v6 = vld [vmem:[%s230_s1 + $0x8] sm:$0xff]  ;;  %v16_v11 = vlaneseq  ;;  %vm74_vm3 = vcmp.ne.s32.totalorder %v14_v2, 0  ;;  %v176_v25 = vmov 0.0  }
   0x4   :  { %vm75_vm4 = vcmp.ne.s32.totalorder %v15_v6, 0  ;;  %v132_v26 = vsel %vm74_vm3, 1.0, %v176_v25  ;;  %vm86_vm5 = vcmask 7168   ;;  %s177_s1 = smov [#allocation2]  }
   0x5   :  { %v57_v15 = vand.u32 127, %v16_v11  ;;  %v133_v27 = vsel %vm75_vm4, 1.0, %v176_v25  ;;  %v99_v28 = vsel %vm86_vm5, %v132_v26, 0.0  ;;  %v17_v62 = vshrl.u32 %v16_v11, 7  ;;  %s124_s17 = sshll.u32 %s177_s1, 4  ;;  %s125_s17 = int_to_ptr.vmem [resolvable:$true] %s124_s17 }
   0x6   :  { %v100_v29 = vsel %vm86_vm5, %v133_v27, 0.0  ;;  %s151_s19 = scalar_lea.vmem %s125_s17, 128  ;;  %p156_p1 = scmp.lt.s32.totalorder %s125_s17, %s125_s17 }
   0x7   :  { %36 = vmax.xlane.f32.xlu0 %v35_v5  ;;  %62 = vperm.xlu1 %141, %v15_v6   ;;  %v101_v30 = vadd.f32 %v100_v29, %v99_v28  ;;  %vm112_vm6 = vcmp.eq.s32.totalorder %v17_v62, 1  ;;  %vm111_vm7 = vcmp.eq.s32.totalorder %v17_v62, 0  ;;  %p152_p0 = scmp.ne.s32.totalorder %s125_s17, %s151_s19  ;;  %p157_p2 = scmp.lt.s32.totalorder %s151_s19, %s151_s19 }
   0x9   :  { %p158_p3 = por %p157_p2, %p156_p1 }
   0xb   :  { %p159_p4 = pnand %p158_p3, %p152_p0 }
  0x82   :  { %v60_v14 = vpop.permute.xlu1 %59 }
  0x83   :  { %vm64_vm1 = vcmp.eq.s32.totalorder %v57_v15, %v60_v14 }
  0x84   :  { %v66_v18 = vsel %vm64_vm1, %v12_v0, 0.0 }
  0x85   :  { %v68_v20 = vsel %vm31_vm0, %v66_v18, 0.0 }
  0x86   :  { %v63_v16 = vpop.permute.xlu1 %62 }
  0x87   :  { %vm65_vm2 = vcmp.eq.s32.totalorder %v57_v15, %v63_v16 }
  0x88   :  { %v67_v22 = vsel %vm65_vm2, %v13_v1, 0.0 }
  0x89   :  { %v71_v24 = vsel %vm31_vm0, %v67_v22, 0.0 }
  0x90   :  { %v34_v7 = vpop.xlane.xlu0 %33 }
  0x91   :  { %v38_v8 = vsub.f32 %v12_v0, %v34_v7 }
  0x93   :  { %v40_v9 = vmul.f32 1.442695, %v38_v8 }
  0x94   :  { %v37_v10 = vpop.xlane.xlu0 %36 }
  0x95   :  { %143 = vpow2.f32 %v40_v9  ;;  %v39_v12 = vsub.f32 %v13_v1, %v37_v10 }
  0x97   :  { %v42_v13 = vmul.f32 1.442695, %v39_v12 }
  0x99   :  { %145 = vpow2.f32 %v42_v13 }
  0x9f   :  { %v144_v17 = vpop.eup %143 }
  0xa0   :  { %v44_v19 = vsel %vm31_vm0, %v144_v17, 0.0 }
  0xa1   :  { %45 = vadd.xlane.f32.xlu0 %v44_v19 }
  0xa3   :  { %v146_v21 = vpop.eup %145 }
  0xa4   :  { %v47_v23 = vsel %vm31_vm0, %v146_v21, 0.0 }
  0xa5   :  { %48 = vadd.xlane.f32.xlu1 %v47_v23  ;;  %69 = vadd.xlane.f32.xlu0 %v68_v20 }
  0xa9   :  { %72 = vadd.xlane.f32.xlu0 %v71_v24 }
 0x12e   :  { %v46_v31 = vpop.xlane.xlu0 %45 }
 0x12f   :  { %147 = vlog2.f32 %v46_v31 }
 0x132   :  { %v49_v32 = vpop.xlane.xlu1 %48  ;;  %v70_v35 = vpop.xlane.xlu0 %69 }
 0x133   :  { %149 = vlog2.f32 %v49_v32 }
 0x136   :  { %v73_v41 = vpop.xlane.xlu0 %72 }
 0x139   :  { %v148_v33 = vpop.eup %147 }
 0x13a   :  { %v51_v34 = vmul.f32 0.6931472, %v148_v33 }
 0x13c   :  { %v54_v36 = vadd.f32 %v51_v34, %v34_v7 }
 0x13d   :  { %v150_v37 = vpop.eup %149 }
 0x13e   :  { %v53_v38 = vmul.f32 0.6931472, %v150_v37  ;;  %v82_v39 = vsub.f32 %v54_v36, %v70_v35 }
 0x140   :  { %v55_v40 = vadd.f32 %v53_v38, %v37_v10  ;;  %v84_v42 = vmul.f32 %v132_v26, %v82_v39 }
 0x142   :  { %v83_v43 = vsub.f32 %v55_v40, %v73_v41  ;;  %v87_v45 = vsel %vm86_vm5, %v84_v42, 0.0 }
 0x144   :  { %v85_v44 = vmul.f32 %v133_v27, %v83_v43 }
 0x146   :  { %v88_v46 = vsel %vm86_vm5, %v85_v44, 0.0 }
 0x147   :  { %v89_v47 = vadd.f32 %v88_v46, %v87_v45 }
 0x149   :  { %90 = vadd.xlane.f32.xlu0 %v89_v47 }
 0x14d   :  { %102 = vadd.xlane.f32.xlu0 %v101_v30 }
 0x1d6   :  { %v91_v48 = vpop.xlane.xlu0 %90 }
 0x1d7   :  { %v92_v49 = vrot.slane %v91_v48, 4 }
 0x1d9   :  { %v93_v50 = vadd.f32 %v92_v49, %v91_v48 }
 0x1da   :  { %v103_v51 = vpop.xlane.xlu0 %102 }
 0x1db   :  { %v94_v52 = vrot.slane %v93_v50, 2  ;;  %v104_v53 = vrot.slane %v103_v51, 4 }
 0x1dd   :  { %v105_v54 = vadd.f32 %v104_v53, %v103_v51  ;;  %v95_v55 = vadd.f32 %v94_v52, %v93_v50 }
 0x1df   :  { %v106_v56 = vrot.slane %v105_v54, 2  ;;  %v96_v57 = vrot.slane %v95_v55, 1 }
 0x1e1   :  { %v107_v58 = vadd.f32 %v106_v56, %v105_v54  ;;  %v97_v59 = vadd.f32 %v96_v57, %v95_v55 }
 0x1e3   :  { %134 = vpush %v97_v59  ;;  %v108_v60 = vrot.slane %v107_v58, 1 }
 0x1e5   :  { %v109_v61 = vadd.f32 %v108_v60, %v107_v58 }
 0x1e7   :  { %136 = vpush %v109_v61 }
 0x214   :  { %s135_s0 = spop %134 }
 0x215   :  { %v115_v0 = vstv %s135_s0 }
 0x218   :  { %s137_s18 = spop %136 }
 0x219   :  { %v113_v63 = vstv %s137_s18 }
 0x21a   :  { %v114_v1 = vsel %vm112_vm6, %v113_v63, 0.0 }
 0x21b   :  { %v116_v2 = vsel %vm111_vm7, %v115_v0, %v114_v1 }
 0x21c   :  { %117 = vst [vmem:[#allocation2] sm:$0xff] %v116_v2 }
 0x21d   :  { %162 = shalt.err (!%p159_p4)
}
 0x21e   :  { %s163_s22 = scalar_lea.hbm %s231_s2, 128 }
 0x21f   :  { %p164_p5 = scmp.ne.s32.totalorder %s231_s2, %s163_s22  ;;  %p167_p6 = scmp.lt.u32.totalorder %s163_s22, %s231_s2 }
 0x221   :  { %p169_p7 = pnand %p167_p6, %p164_p5 }
 0x223   :  { %172 = shalt.err (!%p169_p7)
}
 0x224   :  { %127 = dma.vmem_to_hbm [thread:$0]  %s125_s17, 128, %s231_s2, [#allocation3]  }
 0x225   :  { %173 = dma.done.wait [#allocation3], 128  }
 0x226   :  { %174 = vsyncadd [#allocation3], 4294967168 }
 0x227   :  { %131 = vsyncpa [#allocation3], 1 }

</bundles_post_ra>
